<compile_context>
chip_gen: v7x
topology: tpu7x:2x2x1
jax: 0.10.0
libtpu: 0.0.40
codegen_flags: <defaults>
</compile_context>

<pallas_src>
import warnings
from functools import partial

import jax
import jax.numpy as jnp
from jax import lax
from jax.experimental import pallas as pl
from jax.experimental.pallas import tpu as pltpu


# ----------------------------------------------------------------------------
# pltpu.roll rotation-convention probe (run once, cached, always outside jit).
# The kernel needs shifted[i] = x[i + dw]; with jnp.roll semantics that is
# shift = -dw.  Probe the installed convention so the kernel is correct
# either way.
# ----------------------------------------------------------------------------
_ROLL_SIGN = None


def _roll_sign():
    global _ROLL_SIGN
    if _ROLL_SIGN is None:
        def probe(x_ref, o_ref):
            o_ref[...] = pltpu.roll(x_ref[...], 1, axis=0)

        x = jnp.arange(16 * 128, dtype=jnp.float32).reshape(16, 128)
        y = pl.pallas_call(
            probe, out_shape=jax.ShapeDtypeStruct((16, 128), jnp.float32))(x)
        matches_jnp = bool(jnp.array_equal(y, jnp.roll(x, 1, axis=0)))
        _ROLL_SIGN = -1 if matches_jnp else 1
    return _ROLL_SIGN


# ----------------------------------------------------------------------------
# fused kernel
# ----------------------------------------------------------------------------
def _make_bottleneck_kernel(H, W, Cin, P, TH, roll_sign):
    """conv1x1 -> BN -> ReLU -> conv3x3 -> BN -> ReLU -> conv1x1 -> BN
    -> residual add -> ReLU, one (batch, row-tile) per grid step."""
    Cout = 4 * P
    T = H // TH
    n_rows = TH * W                      # flattened rows of one output tile

    def kernel(x_ref, w1_ref, b1_ref, w2_ref, b2_ref, w3_ref, b3_ref,
               out_ref, h1_ref):
        t = pl.program_id(1)
        row0 = pl.multiple_of(t * TH, TH)

        def conv1(x2d):                  # (rows, Cin) bf16 -> (rows, P) bf16
            h = jnp.dot(x2d, w1_ref[...], preferred_element_type=jnp.float32)
            return jnp.maximum(h + b1_ref[...], 0.0).astype(h1_ref.dtype)

        # ---- conv1x1 (BN1 scale folded) + bias + ReLU on the TH core rows --
        x_core = x_ref[0, pl.ds(row0, TH), :, :].reshape(n_rows, Cin)
        h1_ref[W:W + n_rows, :] = conv1(x_core)

        # ---- one-row halos: compute only where a neighbouring tile exists --
        @pl.when(t > 0)
        def _():
            x_top = x_ref[0, pl.ds(jnp.maximum(row0 - 1, 0), 1), :, :]
            h1_ref[0:W, :] = conv1(x_top.reshape(W, Cin))

        @pl.when(t == 0)
        def _():
            h1_ref[0:W, :] = jnp.zeros((W, P), h1_ref.dtype)

        @pl.when(t < T - 1)
        def _():
            x_bot = x_ref[0, pl.ds(jnp.minimum(row0 + TH, H - 1), 1), :, :]
            h1_ref[(TH + 1) * W:(TH + 2) * W, :] = conv1(x_bot.reshape(W, Cin))

        @pl.when(t == T - 1)
        def _():
            h1_ref[(TH + 1) * W:(TH + 2) * W, :] = jnp.zeros((W, P), h1_ref.dtype)

        # ---- conv3x3 (pad=1): 3 matmuls with K = 3P --------------------------
        # the dw = -1 / 0 / +1 taps are concatenated along the channel axis so
        # each kernel row uses a single MXU contraction over 3P channels.
        col = lax.broadcasted_iota(jnp.int32, (n_rows, 1), 0) % W
        valid_left = col >= 1            # dw = -1 needs column c-1 >= 0
        valid_right = col < (W - 1)      # dw = +1 needs column c+1 <  W
        sl = (roll_sign * -1) % n_rows   # shift for tap[i] = tap0[i-1]
        sr = (roll_sign * 1) % n_rows    # shift for tap[i] = tap0[i+1]

        acc = None
        for dh in range(3):
            # sublane-aligned slice: padded-buffer rows [dh*W, dh*W + TH*W)
            tap0 = h1_ref[dh * W:dh * W + n_rows, :]
            left = jnp.where(valid_left, pltpu.roll(tap0, shift=sl, axis=0), 0)
            right = jnp.where(valid_right, pltpu.roll(tap0, shift=sr, axis=0), 0)
            cat = jnp.concatenate([left, tap0, right], axis=-1)   # (n_rows, 3P)
            contrib = jnp.dot(cat, w2_ref[dh],
                              preferred_element_type=jnp.float32)
            acc = contrib if acc is None else acc + contrib

        # ---- BN2 bias + ReLU, conv1x1 #3 + BN3 bias, residual add + ReLU ----
        h2 = jnp.maximum(acc + b2_ref[...], 0.0)
        h3 = jnp.dot(h2.astype(jnp.bfloat16), w3_ref[...],
                     preferred_element_type=jnp.float32) + b3_ref[...]

        # re-read x from VMEM (short live range) for the identity residual
        x_res = x_ref[0, pl.ds(row0, TH), :, :].reshape(n_rows, Cin)
        out = jnp.maximum(h3 + x_res.astype(jnp.float32), 0.0)
        out_ref[0] = out.reshape(TH, W, Cout).astype(out_ref.dtype)

    return kernel


# ----------------------------------------------------------------------------
# tiling / VMEM sizing helpers
# ----------------------------------------------------------------------------
def _row_tile_budget():
    """Generation-aware per-tile working-set budget (bytes)."""
    try:
        cap = pltpu.get_tpu_info().vmem_capacity_bytes
        return max(4 << 20, cap // 8)        # ~16 MiB on v5e/v6e, ~8 MiB on v7x
    except Exception:
        return 8 << 20


def _pick_row_tile(H, W, Cin, P, requested=None):
    if requested is not None:
        if H % requested != 0:
            raise ValueError(f"row_tile={requested} must divide H={H}")
        return requested
    budget = _row_tile_budget()
    # bytes per output row: x rows (bf16) + h1 (bf16) + out tile (f32) + in-flight
    # f32/bf16 intermediates (cat / acc / h2 / h3) that may spill to VMEM.
    per_row = W * (2 * Cin + 60 * P)
    for d in range(H, 0, -1):
        if H % d == 0 and d * per_row <= budget:
            return d
    warnings.warn("Bottleneck Pallas kernel: no row tile fits the VMEM budget; "
                  "falling back to row_tile=1 (slow).")
    return 1


def _vmem_limit_bytes(H, W, Cin, P, TH):
    Cout = 4 * P
    n_rows = TH * W
    x_img = H * W * Cin * 2                                 # whole bf16 image
    out_tile = n_rows * Cout * 4                            # f32 output tile
    weights = (Cin * P + 9 * P * P + P * Cout) * 2 + (2 * P + Cout) * 4
    scratch = (TH + 2) * W * P * 2                          # bf16 conv1 scratch
    interm = n_rows * (3 * P * 2 + 2 * Cout * 4 + P * 4)    # cat / acc / h2 / h3
    total = 2 * (x_img + out_tile + weights) + scratch + interm + (8 << 20)
    return int(min(max(total, 16 << 20), 64 << 20))


# ----------------------------------------------------------------------------
# forward wrappers
# ----------------------------------------------------------------------------
@partial(jax.jit, static_argnames=("TH", "roll_sign"))
def _bottleneck_impl(x_nchw, params, *, TH, roll_sign):
    # transpose + bf16 cast are jitted together with the pallas_call so they
    # fuse into a single HBM pass instead of separate dispatches.
    x = jnp.transpose(x_nchw.astype(jnp.bfloat16), (0, 2, 3, 1))   # NCHW -> NHWC
    N, H, W, Cin = x.shape
    P = params["w1"].shape[1]
    Cout = params["w3"].shape[1]
    assert Cout == 4 * P and Cin == Cout, \
        "identity residual requires inplanes == planes * 4"
    T = H // TH

    kernel = _make_bottleneck_kernel(H, W, Cin, P, TH, roll_sign)

    def full(shape):
        return pl.BlockSpec(shape, lambda n, t: (0,) * len(shape))

    out_nhwc = pl.pallas_call(
        kernel,
        out_shape=jax.ShapeDtypeStruct((N, H, W, Cout), jnp.float32),
        grid_spec=pltpu.PrefetchScalarGridSpec(
            num_scalar_prefetch=0,
            grid=(N, T),
            in_specs=[
                # whole image resident per batch element, re-used across row tiles
                pl.BlockSpec((1, H, W, Cin), lambda n, t: (n, 0, 0, 0)),
                full((Cin, P)), full((1, P)),          # w1 (BN1-scaled), b1
                full((3, 3 * P, P)), full((1, P)),     # w2 (BN2-scaled, per-dh 3P x P), b2
                full((P, Cout)), full((1, Cout)),      # w3 (BN3-scaled), b3
            ],
            out_specs=pl.BlockSpec((1, TH, W, Cout), lambda n, t: (n, t, 0, 0)),
            scratch_shapes=[
                pltpu.VMEM(((TH + 2) * W, P), jnp.bfloat16),   # conv1 out + H halo
            ],
        ),
        compiler_params=pltpu.CompilerParams(
            dimension_semantics=("parallel", "parallel"),
            vmem_limit_bytes=_vmem_limit_bytes(H, W, Cin, P, TH),
        ),
    )(x, params["w1"], params["b1"], params["w2"], params["b2"],
      params["w3"], params["b3"])

    return jnp.transpose(out_nhwc, (0, 3, 1, 2))               # NHWC -> NCHW


def bottleneck_forward(x_nchw, params, row_tile=None):
    """Fused Bottleneck forward.  x_nchw: (N, Cin, H, W) f32; returns NCHW f32."""
    N, Cin, H, W = x_nchw.shape
    P = params["w1"].shape[1]
    TH = _pick_row_tile(H, W, Cin, P, row_tile)
    return _bottleneck_impl(x_nchw, params, TH=TH, roll_sign=_roll_sign())


# ---------------- deterministic parameter construction ----------------

def build_params(key, inplanes, planes, eps=1e-5):
    ks = jax.random.split(key, 12)
    Cout = planes * 4

    # torch conv weights are OIHW
    w1_oihw = jax.random.normal(ks[0], (planes, inplanes, 1, 1), jnp.float32) * 0.1
    w2_oihw = jax.random.normal(ks[1], (planes, planes, 3, 3), jnp.float32) * 0.1
    w3_oihw = jax.random.normal(ks[2], (Cout, planes, 1, 1), jnp.float32) * 0.1

    def bn_params(kg, kb, km, kv, c):
        g = jax.random.normal(kg, (c,), jnp.float32) * 0.1 + 1.0
        b = jax.random.normal(kb, (c,), jnp.float32) * 0.1
        m = jax.random.normal(km, (c,), jnp.float32) * 0.1
        v = jax.random.uniform(kv, (c,), jnp.float32, 0.5, 1.5)
        return g, b, m, v

    g1, b1, m1, v1 = bn_params(ks[3], ks[4], ks[5], ks[6], planes)
    g2, b2, m2, v2 = bn_params(ks[7], ks[8], ks[9], ks[10], planes)
    g3, b3, m3, v3 = bn_params(*jax.random.split(ks[11], 4), Cout)

    def fold(g, b, m, v):
        s = g / jnp.sqrt(v + eps)
        return s, b - m * s

    s1, bb1 = fold(g1, b1, m1, v1)
    s2, bb2 = fold(g2, b2, m2, v2)
    s3, bb3 = fold(g3, b3, m3, v3)

    # Fold BN scales into the conv weights (per output channel), cast to bf16
    # once on the host; only the folded biases are added in-kernel.
    w1_io = jnp.transpose(w1_oihw[:, :, 0, 0], (1, 0))              # (Cin, P)
    w2_hwio = jnp.transpose(w2_oihw, (2, 3, 1, 0))                  # (3,3,P,P)
    w3_io = jnp.transpose(w3_oihw[:, :, 0, 0], (1, 0))              # (P, 4P)

    kernel_params = {
        "w1": (w1_io * s1[None, :]).astype(jnp.bfloat16),
        # per-dh (3P, P): rows ordered [kw=0 chans, kw=1 chans, kw=2 chans]
        "w2": (w2_hwio * s2[None, None, None, :]
               ).reshape(3, 3 * planes, planes).astype(jnp.bfloat16),
        "w3": (w3_io * s3[None, :]).astype(jnp.bfloat16),
        "b1": bb1[None, :].astype(jnp.float32),
        "b2": bb2[None, :].astype(jnp.float32),
        "b3": bb3[None, :].astype(jnp.float32),
    }
    torch_style = {
        "w1": w1_oihw, "w2": w2_oihw, "w3": w3_oihw,
        "bn1": (g1, b1, m1, v1), "bn2": (g2, b2, m2, v2), "bn3": (g3, b3, m3, v3),
    }
    return kernel_params, torch_style


# ---------------- plain-JAX reference (NCHW, mirrors PyTorch) ----------------

def reference_forward(x, p, eps=1e-5):
    def conv(x, w, pad=0):
        return jax.lax.conv_general_dilated(
            x, w, (1, 1), [(pad, pad), (pad, pad)],
            dimension_numbers=("NCHW", "OIHW", "NCHW"))

    def bn(x, gbmv):
        g, b, m, v = gbmv
        sh = (1, -1, 1, 1)
        return (x - m.reshape(sh)) / jnp.sqrt(v.reshape(sh) + eps) * g.reshape(sh) + b.reshape(sh)

    out = jax.nn.relu(bn(conv(x, p["w1"]), p["bn1"]))
    out = jax.nn.relu(bn(conv(out, p["w2"], pad=1), p["bn2"]))
    out = bn(conv(out, p["w3"]), p["bn3"])
    return jax.nn.relu(out + x)


if __name__ == "__main__":
    key = jax.random.PRNGKey(0)
    kx, kp = jax.random.split(key)

    # small demo shapes: inplanes = planes * expansion so the identity residual applies
    N, planes, H, W = 2, 4, 16, 16
    inplanes = planes * 4                       # 16
    x = jax.random.normal(kx, (N, inplanes, H, W), jnp.float32)

    kernel_params, torch_params = build_params(kp, inplanes, planes)
    ref = reference_forward(x, torch_params)

    # path 1: row_tile=8 -> 2 row tiles per image, exercising the halo path
    out_tiled = jax.block_until_ready(bottleneck_forward(x, kernel_params, row_tile=8))
    # path 2: default tile choice (TH = H, single tile per image)
    out_full = jax.block_until_ready(bottleneck_forward(x, kernel_params))

    for out in (out_tiled, out_full):
        assert out.shape == ref.shape
        max_err = float(jnp.max(jnp.abs(out - ref)))
        # bf16 MXU operands / bf16 residual => relaxed tolerance vs pure-f32 reference
        assert jnp.allclose(out, ref, atol=3e-2, rtol=3e-2), max_err

    print("KERNEL_OK")
</pallas_src>

<mosaic_0001>
module attributes {stable_mosaic.version = 11 : i64} {
  func.func @probe(%arg0: memref<16x128xf32, #tpu.memory_space<vmem>>, %arg1: memref<16x128xf32, #tpu.memory_space<vmem>>) attributes {dimension_semantics = [], scalar_prefetch = 0 : i64, scratch_operands = 0 : i64, tpu.core_type = #tpu.core_type<tc>} {
    %c0 = arith.constant 0 : index
    %c0_0 = arith.constant 0 : index
    %0 = vector.load %arg0[%c0, %c0_0] : memref<16x128xf32, #tpu.memory_space<vmem>>, vector<16x128xf32>
    %c1_i32 = arith.constant 1 : i32
    %1 = tpu.dynamic_rotate %0 by %c1_i32 dim 0 : vector<16x128xf32>, i32 -> vector<16x128xf32>
    %c0_1 = arith.constant 0 : index
    %c0_2 = arith.constant 0 : index
    %2 = vector.load %arg1[%c0_1, %c0_2] : memref<16x128xf32, #tpu.memory_space<vmem>>, vector<16x128xf32>
    tpu.vector_store %arg1[%c0_1, %c0_2], %1 {strides = array<i32>} : memref<16x128xf32, #tpu.memory_space<vmem>>, vector<16x128xf32>,
    return
  }
}

</mosaic_0001>

<bundles_post_ra>
// kernel: tpu_custom_call.1
= control target key start
LH: loop header
LB: loop body
LE: loop exit
PB: predicated region body
PF: predicated region fallthrough
CT: control target
= control target key end

     0   :  { %6 = vsyncpa [#allocation3], 0  ;;  %s147_s0 = inlined_call_operand.hbm [shape: f32[16,128], index: 0, kind: input, shape index: {}]   ;;  %s148_s1 = inlined_call_operand.hbm [shape: f32[16,128], index: 1, kind: output, shape index: {}]  }
   0x1   :  { %7 = vsyncpa [#allocation4], 0  ;;  %s103_s6 = smov [#allocation2]   ;;  %s55_s10 = scalar_lea.hbm %s147_s0, 256 }
   0x2   :  { %s13_s7 = sshll.u32 %s103_s6, 4  ;;  %p56_p0 = scmp.ne.s32.totalorder %s147_s0, %s55_s10  ;;  %s14_s7 = int_to_ptr.vmem [resolvable:$true] %s13_s7 }
   0x3   :  { %p59_p1 = scmp.lt.u32.totalorder %s55_s10, %s147_s0 }
   0x5   :  { %p61_p2 = pnand %p59_p1, %p56_p0 }
   0x7   :  { %64 = shalt.err (!%p61_p2)
}
   0x8   :  { %s65_s15 = scalar_lea.vmem %s14_s7, 256  ;;  %p70_p4 = scmp.lt.s32.totalorder %s14_s7, %s14_s7 }
   0x9   :  { %p66_p3 = scmp.ne.s32.totalorder %s14_s7, %s65_s15  ;;  %p71_p5 = scmp.lt.s32.totalorder %s65_s15, %s65_s15 }
   0xb   :  { %p72_p6 = por %p71_p5, %p70_p4 }
   0xd   :  { %p73_p7 = pnand %p72_p6, %p66_p3 }
   0xf   :  { %76 = shalt.err (!%p73_p7)
}
  0x10   :  { %s104_s16 = smov 128   ;;  %s105_s17 = smov 8  }
  0x11   :  { %19 = dma.hbm_to_vmem [thread:$0]  %s147_s0, 256, %s14_s7, [#allocation3], %s104_s16, %s104_s16, %s105_s17  }
  0x12   :  { %99 = dma.done.wait [#allocation3], 256  }
  0x13   :  { %100 = vsyncadd [#allocation3], 4294967040  ;;  %v27_v0 = vlaneseq  ;;  %s106_s20 = smov [#allocation5]   ;;  %v23_v2 = vld [vmem:[#allocation2] sm:$0xff]  ;;  %v24_v3 = vld [vmem:[#allocation2 + $0x8] sm:$0xff] }
  0x14   :  { %s39_s21 = sshll.u32 %s106_s20, 4  ;;  %v25_v4 = vrot.slane %v23_v2, 7  ;;  %v26_v5 = vrot.slane %v24_v3, 7  ;;  %s40_s21 = int_to_ptr.vmem [resolvable:$true] %s39_s21 }
  0x15   :  { %v28_v1 = vshrl.u32 %v27_v0, 7  ;;  %s77_s22 = scalar_lea.vmem %s40_s21, 256  ;;  %p82_p9 = scmp.lt.s32.totalorder %s40_s21, %s40_s21 }
  0x16   :  { %p78_p8 = scmp.ne.s32.totalorder %s40_s21, %s77_s22  ;;  %p83_p10 = scmp.lt.s32.totalorder %s77_s22, %s77_s22 }
  0x17   :  { %vm29_vm0 = vcmp.lt.s32.totalorder %v28_v1, 1 }
  0x18   :  { %v31_v6 = vsel %vm29_vm0, %v26_v5, %v25_v4  ;;  %v30_v7 = vsel %vm29_vm0, %v25_v4, %v26_v5  ;;  %p84_p11 = por %p83_p10, %p82_p9 }
  0x19   :  { %32 = vst [vmem:[#allocation5] sm:$0xff] %v31_v6  ;;  %33 = vst [vmem:[#allocation5 + $0x8] sm:$0xff] %v30_v7 }
  0x1a   :  { %p85_p12 = pnand %p84_p11, %p78_p8 }
  0x1c   :  { %88 = shalt.err (!%p85_p12)
}
  0x1d   :  { %s89_s24 = scalar_lea.hbm %s148_s1, 256 }
  0x1e   :  { %p90_p13 = scmp.ne.s32.totalorder %s148_s1, %s89_s24  ;;  %p93_p0 = scmp.lt.u32.totalorder %s89_s24, %s148_s1 }
  0x20   :  { %p95_p1 = pnand %p93_p0, %p90_p13 }
  0x22   :  { %98 = shalt.err (!%p95_p1)
}
  0x23   :  { %45 = dma.vmem_to_hbm [thread:$0]  %s40_s21, 256, %s148_s1, [#allocation4], %s104_s16, %s104_s16, %s105_s17  }
  0x24   :  { %101 = dma.done.wait [#allocation4], 256  }
  0x25   :  { %102 = vsyncadd [#allocation4], 4294967040 }
  0x26   :  { %49 = vsyncpa [#allocation3], 1 }
  0x27   :  { %50 = vsyncpa [#allocation4], 1 }

</bundles_post_ra>
